<compile_context>
chip_gen: v7x
topology: tpu7x:2x2x1
jax: 0.10.0
libtpu: 0.0.40
codegen_flags: <defaults>
</compile_context>

<pallas_src>
import jax
import jax.numpy as jnp
from jax.experimental import pallas as pl
from jax.experimental.pallas import tpu as pltpu

_INV_TEMP = 1.0 / 1.05


def _ce_kernel(targets_ref, x_ref, out_ref):
    b = pl.program_id(0)
    s = pl.program_id(1)

    # Output block is resident across the S axis -> init at the first S step.
    @pl.when(s == 0)
    def _():
        out_ref[...] = jnp.zeros_like(out_ref)

    inv_t = jnp.float32(_INV_TEMP)

    # (1, C, T) tile, scaled logits in f32.
    x = x_ref[...].astype(jnp.float32) * inv_t

    # Numerically-stable log-sum-exp over the channel axis.
    m = jnp.max(x, axis=1, keepdims=True)                                  # (1, 1, T)
    lse = jnp.log(jnp.sum(jnp.exp(x - m), axis=1, keepdims=True)) + m      # (1, 1, T)

    # Target row via dynamic sublane slice (target class id lives in SMEM).
    tgt = targets_ref[b]
    tgt_row = x_ref[:, pl.ds(tgt, 1), :].astype(jnp.float32) * inv_t       # (1, 1, T)

    # Per-position negative log-likelihood, accumulated lane-dense.
    out_ref[...] += lse - tgt_row


def _choose_s_tile(S, C, itemsize):
    """Largest multiple-of-128 divisor of S that keeps a double-buffered input tile
    comfortably inside scoped VMEM on v5e/v6e/v7x; falls back to the full S."""
    if S % 128 != 0:
        return S  # full-extent block (still correct; masked loads on ragged lanes)
    budget = 8 * 1024 * 1024  # bytes per single input buffer (x2 for double-buffering)
    cap = max(128, budget // max(1, C * itemsize))
    best = None
    t = 128
    while t <= S:
        if S % t == 0 and t <= cap and t <= 8192:
            best = t
        t += 128
    return best if best is not None else S


def cross_entropy_loss(inputs, targets):
    """inputs: (B, C, H, W) float; targets: (B,) int class ids. Returns scalar f32."""
    B, C = inputs.shape[0], inputs.shape[1]
    S = 1
    for d in inputs.shape[2:]:
        S *= d
    x = inputs.reshape(B, C, S)
    targets = targets.astype(jnp.int32)
    itemsize = jnp.dtype(x.dtype).itemsize

    s_tile = _choose_s_tile(S, C, itemsize)
    num_s = S // s_tile

    partials = pl.pallas_call(
        _ce_kernel,
        out_shape=jax.ShapeDtypeStruct((B, 1, s_tile), jnp.float32),
        grid_spec=pltpu.PrefetchScalarGridSpec(
            num_scalar_prefetch=1,                        # targets -> SMEM
            grid=(B, num_s),
            in_specs=[
                pl.BlockSpec((1, C, s_tile), lambda b, s, tgt: (b, 0, s)),
            ],
            out_specs=pl.BlockSpec((1, 1, s_tile), lambda b, s, tgt: (b, 0, 0)),
        ),
        compiler_params=pltpu.CompilerParams(
            dimension_semantics=("parallel", "arbitrary"),
            vmem_limit_bytes=32 * 1024 * 1024,
        ),
        cost_estimate=pl.CostEstimate(
            flops=4 * B * C * S,
            transcendentals=B * C * S + B * S,
            bytes_accessed=B * C * S * itemsize + B * s_tile * 4,
        ),
    )(targets, x)

    # Tiny epilogue reduction + normalization by the FULL B*S.
    return jnp.sum(partials) / jnp.float32(B * S)


def _reference(inputs, targets):
    B, C = inputs.shape[0], inputs.shape[1]
    x = inputs.reshape(B, C, -1).astype(jnp.float32)
    S = x.shape[2]
    logp = jax.nn.log_softmax(x / 1.05, axis=1)
    onehot = jax.nn.one_hot(targets, C, dtype=jnp.float32)[:, :, None]
    loss = jnp.sum(jnp.mean(-onehot * logp, axis=0))
    return loss / S


if __name__ == "__main__":
    key = jax.random.PRNGKey(0)
    k1, k2 = jax.random.split(key)

    B, C, H, W = 2, 4, 16, 16
    inputs = jax.random.normal(k1, (B, C, H, W), dtype=jnp.float32)
    targets = jax.random.randint(k2, (B,), 0, C, dtype=jnp.int32)

    out = cross_entropy_loss(inputs, targets)
    out = jax.block_until_ready(out)

    ref = _reference(inputs, targets)
    assert jnp.allclose(out, ref, atol=1e-5, rtol=1e-5), (out, ref)

    print("KERNEL_OK")
</pallas_src>

<mosaic_0001>
module attributes {stable_mosaic.version = 11 : i64} {
  func.func @_ce_kernel(%arg0: i32, %arg1: i32, %arg2: memref<2xi32, #tpu.memory_space<smem>>, %arg3: memref<1x4x256xf32, #tpu.memory_space<vmem>>, %arg4: memref<1x1x256xf32, #tpu.memory_space<vmem>>) attributes {dimension_semantics = [#tpu.dimension_semantics<parallel>, #tpu.dimension_semantics<arbitrary>], iteration_bounds = array<i64: 2, 1>, scalar_prefetch = 1 : i64, scratch_operands = 0 : i64, tpu.core_type = #tpu.core_type<tc>, window_params = [{transform_indices = @transform_0, window_bounds = array<i64: 1, 4, 256>}, {transform_indices = @transform_1, window_bounds = array<i64: 1, 1, 256>}]} {
    %c0_i32 = arith.constant 0 : i32
    %0 = arith.cmpi eq, %arg1, %c0_i32 : i32
    %1 = arith.extui %0 : i1 to i32
    %c0_i32_0 = arith.constant 0 : i32
    %2 = arith.cmpi ne, %1, %c0_i32_0 : i32
    scf.if %2 {
      %cst_14 = arith.constant 0.000000e+00 : f32
      %25 = vector.broadcast %cst_14 : f32 to vector<1x1x256xf32>
      %c0_15 = arith.constant 0 : index
      %c0_16 = arith.constant 0 : index
      %c0_17 = arith.constant 0 : index
      %26 = vector.load %arg4[%c0_15, %c0_16, %c0_17] : memref<1x1x256xf32, #tpu.memory_space<vmem>>, vector<1x1x256xf32>
      tpu.vector_store %arg4[%c0_15, %c0_16, %c0_17], %25 {strides = array<i32>} : memref<1x1x256xf32, #tpu.memory_space<vmem>>, vector<1x1x256xf32>,
    } else {
    }
    %c0 = arith.constant 0 : index
    %c0_1 = arith.constant 0 : index
    %c0_2 = arith.constant 0 : index
    %3 = vector.load %arg3[%c0, %c0_1, %c0_2] : memref<1x4x256xf32, #tpu.memory_space<vmem>>, vector<1x4x256xf32>
    %cst = arith.constant 0.952380955 : f32
    %4 = vector.broadcast %cst : f32 to vector<1x4x256xf32>
    %5 = arith.mulf %3, %4 : vector<1x4x256xf32>
    %cst_3 = arith.constant dense<0xFF800000> : vector<1x256xf32>
    %6 = vector.multi_reduction <maximumf>, %5, %cst_3 [1] : vector<1x4x256xf32> to vector<1x256xf32>
    %7 = vector.shape_cast %6 : vector<1x256xf32> to vector<1x1x256xf32>
    %8 = vector.broadcast %7 : vector<1x1x256xf32> to vector<1x4x256xf32>
    %9 = arith.subf %5, %8 : vector<1x4x256xf32>
    %10 = math.exp %9 : vector<1x4x256xf32>
    %cst_4 = arith.constant dense<0.000000e+00> : vector<1x256xf32>
    %11 = vector.multi_reduction <add>, %10, %cst_4 [1] : vector<1x4x256xf32> to vector<1x256xf32>
    %12 = vector.shape_cast %11 : vector<1x256xf32> to vector<1x1x256xf32>
    %13 = math.log %12 : vector<1x1x256xf32>
    %14 = arith.addf %13, %7 : vector<1x1x256xf32>
    %15 = arith.index_cast %arg0 : i32 to index
    %16 = memref.load %arg2[%15] : memref<2xi32, #tpu.memory_space<smem>>
    %c0_5 = arith.constant 0 : index
    %17 = arith.index_cast %16 : i32 to index
    %c0_6 = arith.constant 0 : index
    %18 = vector.load %arg3[%c0_5, %17, %c0_6] : memref<1x4x256xf32, #tpu.memory_space<vmem>>, vector<1x1x256xf32>
    %cst_7 = arith.constant 0.952380955 : f32
    %19 = vector.broadcast %cst_7 : f32 to vector<1x1x256xf32>
    %20 = arith.mulf %18, %19 : vector<1x1x256xf32>
    %c0_8 = arith.constant 0 : index
    %c0_9 = arith.constant 0 : index
    %c0_10 = arith.constant 0 : index
    %21 = vector.load %arg4[%c0_8, %c0_9, %c0_10] : memref<1x1x256xf32, #tpu.memory_space<vmem>>, vector<1x1x256xf32>
    %22 = arith.subf %14, %20 : vector<1x1x256xf32>
    %23 = arith.addf %21, %22 : vector<1x1x256xf32>
    %c0_11 = arith.constant 0 : index
    %c0_12 = arith.constant 0 : index
    %c0_13 = arith.constant 0 : index
    %24 = vector.load %arg4[%c0_11, %c0_12, %c0_13] : memref<1x1x256xf32, #tpu.memory_space<vmem>>, vector<1x1x256xf32>
    tpu.vector_store %arg4[%c0_11, %c0_12, %c0_13], %23 {strides = array<i32>} : memref<1x1x256xf32, #tpu.memory_space<vmem>>, vector<1x1x256xf32>,
    return
  }
  func.func @transform_0(%arg0: i32, %arg1: i32, %arg2: memref<2xi32, #tpu.memory_space<smem>>) -> (i32, i32, i32) {
    %c0_i32 = arith.constant 0 : i32
    %c0_i32_0 = arith.constant 0 : i32
    return %arg0, %c0_i32, %arg1 : i32, i32, i32
  }
  func.func @transform_1(%arg0: i32, %arg1: i32, %arg2: memref<2xi32, #tpu.memory_space<smem>>) -> (i32, i32, i32) {
    %c0_i32 = arith.constant 0 : i32
    %c0_i32_0 = arith.constant 0 : i32
    %c0_i32_1 = arith.constant 0 : i32
    return %arg0, %c0_i32, %c0_i32_0 : i32, i32, i32
  }
}

</mosaic_0001>

<bundles_post_ra>
// kernel: tpu_custom_call.1
= control target key start
LH: loop header
LB: loop body
LE: loop exit
PB: predicated region body
PF: predicated region fallthrough
CT: control target
= control target key end

     0   :  { %s807_s0 = inlined_call_operand.hbm [shape: s32[2], index: 0, kind: input, shape index: {}]   ;;  %s808_s1 = inlined_call_operand.hbm [shape: f32[2,4,256], index: 1, kind: input, shape index: {}]   ;;  %s809_s2 = inlined_call_operand.hbm [shape: f32[2,1,256], index: 2, kind: output, shape index: {}]  }
   0x1   :  { %s453_s11 = scalar_lea.hbm %s807_s0, 16 }
   0x2   :  { %p454_p0 = scmp.ne.s32.totalorder %s807_s0, %s453_s11  ;;  %p457_p1 = scmp.lt.u32.totalorder %s453_s11, %s807_s0 }
   0x4   :  { %p459_p2 = pnand %p457_p1, %p454_p0 }
   0x6   :  { %462 = shalt.err (!%p459_p2)  }
   0x7   :  { %s579_s16 = smov [#allocation3]  }
   0x8   :  { %8 = dma.hbm_to_smem %s807_s0, 16, %s579_s16, [#allocation2] }
   0x9   :  { %545 = dma.done.wait [#allocation2], 16 }
   0xa   :  { %546 = vsyncadd [#allocation2], 4294967280 }
   0xb   :  { %10 = sfence }
   0xc   :  { %11 = vsyncpa [#allocation5], 0 }
   0xd   :  { %13 = vsyncpa [#allocation5 + $0x1], 0 }
   0xe   :  { %14 = vsyncpa [#allocation6], 0 }
   0xf   :  { %16 = vsyncpa [#allocation6 + $0x1], 0  ;;  %s611_s19 = smov 0   ;;  %s613_s20 = smov 0  }
  0x10   :  { %s615_s21 = smov 0   ;;  %s617_s22 = smov 0  }
  0x11   :  { %s619_s23 = smov 0   ;;  %s621_s24 = smov 0  }
  0x12 LB: > { %s362_s0 = sadd.s32 4294967295, %s577_s24   ;;  %s363_s25 = sadd.s32 4294967294, %s577_s24   ;;  %s577_s24 = sphi %s621_s24, %s22_s24   ;;  %s573_s23 = sphi %s619_s23, %s827_s23   ;;  %s569_s22 = sphi %s617_s22, %s826_s22   ;;  %s565_s21 = sphi %s615_s21, %s825_s21   ;;  %s561_s20 = sphi %s613_s20, %s824_s20   ;;  %s557_s19 = sphi %s611_s19, %s823_s19  }
  0x13   : > { %s34_s26 = sadd.s32 1, %s573_s23  ;;  %s43_s27 = sadd.s32 1, %s565_s21 }
  0x14   : > { %p36_p3 = scmp.ge.s32.totalorder %s34_s26, 2  ;;  %p50_p4 = scmp.ne.s32.totalorder %s565_s21, %s561_s20 }
  0x15   : > { %p51_p5 = scmp.eq.s32.totalorder %s577_s24, 0  ;;  %p56_p6 = scmp.ne.s32.totalorder %s561_s20, %s557_s19 }
  0x16   : > { %s829_s26 = smov (%p36_p3, %s34_s26), 0  ;;  %p57_p8 = scmp.eq.s32.totalorder %s362_s0, 0 }
  0x17   : > { %p652_p7 = por %p51_p5, %p50_p4  ;;  %s38_s29 = ssub.s32 %s573_s23, %s829_s26 }
  0x18   : > { %p80_p9 = scmp.eq.s32.totalorder %s362_s0, 1  ;;  %p41_p10 = scmp.eq.s32.totalorder %s38_s29, 0 }
  0x19   : > { %p658_p11 = por %p57_p8, %p56_p6  ;;  %p86_p13 = scmp.eq.s32.totalorder %s363_s25, 1 }
  0x1a   : > { %p662_p12 = por %p80_p9, %p50_p4  ;;  %p394_p2 = scmp.lt.s32.totalorder %s577_s24, 2 }
  0x1b   : > { %s667_s4 = scalar_select %p41_p10, %s565_s21, %s43_s27  }
  0x1c   : > { %s813_s3 = scalar_select %p662_p12, 1, 0 }
  0x1d   : > { %p669_p0 = por %p86_p13, %p56_p6  ;;  %s106_s6 = sand.u32 1, %s565_s21  }
  0x1e   : > { %s366_s7 = sshll.u32 %s106_s6, 3  ;;  %s379_s8 = sshll.u32 %s573_s23, 7 }
  0x1f   : > { %s814_s5 = scalar_select %p669_p0, 1, 0 }
  0x20   : > { %s680_s11 = scalar_lea.hbm %s808_s1, %s379_s8  ;;  %s110_s12 = scalar_lea.vmem [#allocation4], %s366_s7 }
  0x21   : > { %s120_s13 = sshll.u32 %s110_s12, 4  ;;  %p686_p3 = pnand %p394_p2, %p652_p7  ;;  %s682_s13 = int_to_ptr.vmem [resolvable:$true] %s120_s13 }
  0x22   : > { %s107_s15 = scalar_lea.sflag [#allocation5], %s106_s6  ;;  %s463_s16 = scalar_lea.hbm %s680_s11, 128 }
  0x23   : > { %p464_p6 = scmp.ne.s32.totalorder %s680_s11, %s463_s16  ;;  %p465_p8 = pneg %p686_p3 }
  0x24   : > { %s468_s0 = scalar_lea.hbm %s808_s1, 256  ;;  %p469_p7 = scmp.lt.u32.totalorder %s680_s11, %s808_s1 }
  0x25   : > { %p466_p9 = pnand %p465_p8, %p464_p6  ;;  %p470_p13 = scmp.lt.u32.totalorder %s468_s0, %s463_s16 }
  0x26   : > { %p472_p1 = scmp.lt.u32.totalorder %s463_s16, %s680_s11 }
  0x27   : > { %p467_p10 = pneg %p466_p9  ;;  %p471_p2 = por %p470_p13, %p469_p7 }
  0x29   : > { %p473_p4 = por %p472_p1, %p471_p2 }
  0x2b   : > { %p474_p5 = pnand %p473_p4, %p467_p10 }
  0x2d   : > { %477 = shalt.err (!%p474_p5)
}
  0x2e   : > { %s478_s28 = scalar_lea.vmem %s682_s13, 128  ;;  %s580_s29 = smov [#allocation4]  }
  0x2f   : > { %p479_p6 = scmp.ne.s32.totalorder %s682_s13, %s478_s28  ;;  %s483_s6 = sshll.u32 %s580_s29, 4  ;;  %s484_s6 = int_to_ptr.vmem [resolvable:$false] %s483_s6 }
  0x30   : > { %s485_s7 = scalar_lea.vmem %s484_s6, 256  ;;  %p486_p12 = scmp.lt.s32.totalorder %s682_s13, %s484_s6 }
  0x31   : > { %p481_p9 = pnand %p479_p6, %p465_p8  ;;  %p487_p7 = scmp.lt.s32.totalorder %s485_s7, %s478_s28 }
  0x33   : > { %p482_p0 = pneg %p481_p9  ;;  %p488_p13 = por %p487_p7, %p486_p12 }
  0x35   : > { %p489_p1 = pnand %p488_p13, %p482_p0 }
  0x37   : > { %492 = shalt.err (!%p489_p1)
}
  0x38   : > { %389 = dma.hbm_to_vmem [thread:$0]  (!%p686_p3), %s680_s11, 128, %s682_s13, %s107_s15  }
  0x39   : > { %p816_p4 = scmp.lt.s32.totalorder %s577_s24, 3  ;;  %p817_p5 = scmp.ge.s32.totalorder %s577_s24, 1 }
  0x3b   : > { %p126_p8 = pnand %p817_p5, %p816_p4 }
  0x3c   : > { %s722_s8 = sand.u32 (!%p126_p8), 1, %s561_s20  }
  0x3d   : > { %129 = sbr.rel (%p126_p8) target bundleno = 158 (0x9e), region = 24  ;;  %s370_s9 = sshll.u32 (!%p126_p8), %s722_s8, 3 }
  0x3e   : > { %s132_s10 = scalar_lea.sflag (!%p126_p8), [#allocation5], %s722_s8  ;;  %s726_s12 = scalar_lea.vmem (!%p126_p8), [#allocation4], %s370_s9 }
  0x44   : > { %548 = dma.done.wait (%p658_p11), %s132_s10, 128  }
  0x45   : > { %550 = vsyncadd (%p658_p11), %s132_s10, 4294967168  ;;  %s371_s11 = sshll.u32 %s722_s8, 1  ;;  %v159_v0 = vlaneseq  ;;  %v581_v2 = vmov 0.0   ;;  %v164_v3 = vld [vmem:[%s726_s12] sm:$0xff]  ;;  %vm169_vm1 = vcmask 1043456   ;;  %s214_s30 = sld [smem:[#allocation3 + %s569_s22]] }
  0x46   : > { %s737_s13 = scalar_lea.vmem [#allocation7], %s371_s11  ;;  %v165_v4 = vmul.f32 0.95238096, %v164_v3  ;;  %v582_v44 = vmov 1966171168   ;;  %s381_s0 = sshll.u32 %s569_s22, 5 }
  0x47   : > { %vm733_vm0 = vcmp.lt.s32.totalorder %v159_v0, 256  ;;  %v228_v39 = vshrl.u32 %v159_v0, 7  ;;  %v243_v45 = vunpack.c.l.s4 %v582_v44  ;;  %s278_s25 = sshll.u32 %s737_s13, 4  ;;  %s755_s29 = scalar_lea.hbm %s809_s2, %s381_s0  ;;  %s757_s25 = int_to_ptr.vmem [resolvable:$true] %s278_s25 }
  0x48   : > { %163 = vst.msk [vmem:[%s737_s13] sm:$0x3] %vm733_vm0, %v581_v2  ;;  %v167_v5 = vcombine.high %v165_v4, %v165_v4  ;;  %v170_v6 = vsel %vm169_vm1, %v165_v4, -inf  ;;  %s264_s6 = scalar_lea.sflag [#allocation6], %s722_s8  ;;  %s493_s7 = scalar_lea.vmem %s757_s25, 32 }
  0x49   : > { %v171_v7 = vrot.slane %v170_v6, 4  ;;  %v229_v42 = vsub.s32 0, %v228_v39  ;;  %v233_v43 = vsub.s32 1, %v228_v39  ;;  %v244_v53 = vunpack.c.0.s8 %v243_v45  ;;  %p494_p11 = scmp.ne.s32.totalorder %s757_s25, %s493_s7  ;;  %p820_p12 = scmp.ne.s32.totalorder %s813_s3, 0 }
  0x4a   : > { %v177_v8 = vsel %vm169_vm1, %v167_v5, -inf  ;;  %s583_s22 = smov [#allocation7]  }
  0x4b   : > { %v172_v9 = vmax.f32 %v170_v6, %v171_v7  ;;  %v178_v10 = vrot.slane %v177_v8, 4  ;;  %s215_s14 = sshra.s32 %s214_s30, 2  ;;  %s218_s15 = sand.u32 3, %s214_s30  ;;  %v247_v57 = vsub.s32 %v244_v53, %v228_v39 }
  0x4c   : > { %s380_s16 = sshll.u32 %s215_s14, 3  ;;  %p495_p0 = pnand %p494_p11, %p820_p12 }
  0x4d   : > { %v173_v11 = vrot.slane %v172_v9, 2  ;;  %v179_v12 = vmax.f32 %v177_v8, %v178_v10  ;;  %s221_s17 = sadd.s32 %s380_s16, %s218_s15  ;;  %s497_s9 = sshll.u32 %s583_s22, 4  ;;  %s498_s9 = int_to_ptr.vmem [resolvable:$false] %s497_s9 }
  0x4e   : > { %s222_s18 = scalar_lea.vmem %s726_s12, %s221_s17 [#allocation4]  ;;  %p496_p3 = pneg %p495_p0 }
  0x4f   : > { %v174_v13 = vmax.f32 %v172_v9, %v173_v11  ;;  %v180_v14 = vrot.slane %v179_v12, 2  ;;  %v223_v40 = vld [vmem:[%s222_s18] ss:$4 sm:$0x3]  ;;  %v225_v60 = vld [vmem:[%s737_s13] sm:$0x3]  ;;  %p500_p10 = scmp.lt.s32.totalorder %s757_s25, %s498_s9 }
  0x50   : > { %v224_v41 = vmul.f32 0.95238096, %v223_v40  ;;  %s499_s10 = scalar_lea.vmem %s498_s9, 64 }
  0x51   : > { %v175_v15 = vrot.slane %v174_v13, 1  ;;  %v181_v16 = vmax.f32 %v179_v12, %v180_v14  ;;  %p501_p2 = scmp.lt.s32.totalorder %s499_s10, %s493_s7 }
  0x52   : > { %v230_v48 = vrot.slane %v224_v41, %v229_v42  ;;  %v234_v52 = vrot.slane %v224_v41, %v233_v43 }
  0x53   : > { %v176_v17 = vmax.f32 %v174_v13, %v175_v15  ;;  %v182_v18 = vrot.slane %v181_v16, 1  ;;  %p502_p6 = por %p501_p2, %p500_p10 }
  0x55   : > { %v183_v19 = vmax.f32 %v181_v16, %v182_v18  ;;  %p503_p9 = pnand %p502_p6, %p496_p3 }
  0x57   : > { %v186_v20 = vcombine.low %v176_v17, %v183_v19 }
  0x59   : > { %v188_v21 = vsub.f32 %v165_v4, %v186_v20 }
  0x5b   : > { %v189_v22 = vmul.f32 1.442695, %v188_v21 }
  0x5d   : > { %447 = vpow2.f32 %v189_v22 }
  0x67   : > { %v448_v23 = vpop.eup %447 }
  0x68   : > { %v192_v24 = vcombine.high %v448_v23, %v448_v23  ;;  %v194_v25 = vsel %vm169_vm1, %v448_v23, 0.0 }
  0x69   : > { %v195_v26 = vrot.slane %v194_v25, 4 }
  0x6a   : > { %v201_v27 = vsel %vm169_vm1, %v192_v24, 0.0 }
  0x6b   : > { %v196_v28 = vadd.f32 %v195_v26, %v194_v25  ;;  %v202_v29 = vrot.slane %v201_v27, 4 }
  0x6d   : > { %v197_v30 = vrot.slane %v196_v28, 2  ;;  %v203_v31 = vadd.f32 %v202_v29, %v201_v27 }
  0x6f   : > { %v198_v32 = vadd.f32 %v197_v30, %v196_v28  ;;  %v204_v33 = vrot.slane %v203_v31, 2 }
  0x71   : > { %v199_v34 = vrot.slane %v198_v32, 1  ;;  %v205_v35 = vadd.f32 %v204_v33, %v203_v31 }
  0x73   : > { %v200_v36 = vadd.f32 %v199_v34, %v198_v32  ;;  %v206_v37 = vrot.slane %v205_v35, 1 }
  0x75   : > { %v207_v38 = vadd.f32 %v206_v37, %v205_v35  ;;  %449 = vlog2.f32 %v200_v36 }
  0x77   : > { %451 = vlog2.f32 %v207_v38 }
  0x7f   : > { %v450_v46 = vpop.eup %449 }
  0x80   : > { %v209_v47 = vmul.f32 0.6931472, %v450_v46 }
  0x81   : > { %v452_v49 = vpop.eup %451 }
  0x82   : > { %v211_v50 = vmul.f32 0.6931472, %v452_v49  ;;  %v212_v51 = vadd.f32 %v209_v47, %v176_v17 }
  0x84   : > { %v213_v54 = vadd.f32 %v211_v50, %v183_v19  ;;  %v237_v55 = vsub.f32 %v212_v51, %v230_v48 }
  0x86   : > { %v238_v56 = vsub.f32 %v213_v54, %v234_v52 }
  0x88   : > { %v241_v58 = vcombine.low %v237_v55, %v238_v56 }
  0x8a   : > { %v248_v59 = vrot.slane %v241_v58, %v247_v57 }
  0x8c   : > { %v255_v61 = vrot.slane %v248_v59, %v247_v57 }
  0x8e   : > { %v257_v62 = vadd.f32 %v255_v61, %v225_v60 }
  0x90   : > { %262 = vst.msk [vmem:[%s737_s13] sm:$0x3] %vm733_vm0, %v257_v62 }
  0x91   : > { %506 = shalt.err (!%p503_p9)
}
  0x92   : > { %s507_s8 = scalar_lea.hbm %s755_s29, 32  ;;  %s511_s13 = scalar_lea.hbm %s809_s2, 64 }
  0x93   : > { %p508_p7 = scmp.ne.s32.totalorder %s755_s29, %s507_s8  ;;  %p512_p4 = scmp.lt.u32.totalorder %s755_s29, %s809_s2 }
  0x94   : > { %p513_p5 = scmp.lt.u32.totalorder %s511_s13, %s507_s8  ;;  %p515_p11 = scmp.lt.u32.totalorder %s507_s8, %s755_s29 }
  0x95   : > { %p509_p13 = pnand %p508_p7, %p820_p12 }
  0x96   : > { %p514_p8 = por %p513_p5, %p512_p4 }
  0x97   : > { %p510_p1 = pneg %p509_p13 }
  0x98   : > { %p516_p0 = por %p515_p11, %p514_p8 }
  0x9a   : > { %p517_p3 = pnand %p516_p0, %p510_p1 }
  0x9c   : > { %520 = shalt.err (!%p517_p3)
}
  0x9d   : > { %384 = dma.vmem_to_hbm [thread:$0]  (%p820_p12), %s757_s25, 32, %s755_s29, %s264_s6  }
  0x9e PF: > { %s290_s15 = sand.u32 1, %s557_s19   ;;  %p821_p10 = scmp.ne.s32.totalorder %s814_s5, 0 }
  0x9f   : > { %p822_p2 = scmp.ge.s32.totalorder %s577_s24, 2  ;;  %s291_s16 = scalar_lea.sflag [#allocation6], %s290_s15 }
  0xa1   : > { %p391_p6 = pnand %p822_p2, %p821_p10 }
  0xa3   : > { %552 = dma.done.wait (!%p391_p6), %s291_s16, 32  }
  0xa4   : > { %554 = vsyncadd (!%p391_p6), %s291_s16, 4294967264  ;;  %s22_s24 = sadd.s32 1, %s577_s24   ;;  %s823_s19 = smov %s561_s20 }
  0xa5   : > { %p19_p9 = scmp.ge.s32.totalorder %s22_s24, 4   ;;  %s824_s20 = smov %s565_s21 }
  0xa6   : > { %s825_s21 = smov %s667_s4  ;;  %s826_s22 = smov %s573_s23 }
  0xa7   : > { %s827_s23 = smov %s829_s26  ;;  %21 = sbr.rel (!%p19_p9) target bundleno = 18 (0x12), region = 74 }
  0xae   :  { %296 = vsyncpa [#allocation5], 1 }
  0xaf   :  { %298 = vsyncpa [#allocation5 + $0x1], 1 }
  0xb0   :  { %299 = vsyncpa [#allocation6], 1 }
  0xb1   :  { %301 = vsyncpa [#allocation6 + $0x1], 1 }

</bundles_post_ra>
